<compile_context>
chip_gen: v7x
topology: tpu7x:2x2x1
jax: 0.10.0
libtpu: 0.0.40
codegen_flags: <defaults>
</compile_context>

<pallas_src>
import functools

import jax
import jax.numpy as jnp
from jax import lax
from jax.experimental import pallas as pl
from jax.experimental.pallas import tpu as pltpu


def _cdiv(a, b):
    return -(-a // b)


def _round_up(a, b):
    return _cdiv(a, b) * b


def _aftl_partial_kernel(yp_ref, yt_ref, tp_ref, den_ref,
                         tp_acc, den_acc,
                         *, delta, tile, n_s, s_total, needs_mask):
    s_idx = pl.program_id(2)

    @pl.when(s_idx == 0)
    def _():
        tp_acc[...] = jnp.zeros_like(tp_acc)
        den_acc[...] = jnp.zeros_like(den_acc)

    logits = yp_ref[0].astype(jnp.float32)      # (C, St)
    labels = yt_ref[0].astype(jnp.int32)        # (1, St)

    # softmax over the class axis (axis 0 of the tile == dim 1 of NCDHW).
    m = jnp.max(logits, axis=0, keepdims=True)
    e = jnp.exp(logits - m)
    # One exact reciprocal per voxel (1, St), then C cheap multiplies, instead
    # of C divisions.  (An approx EUP reciprocal would perturb the accumulated
    # sums beyond the tight reference tolerance; the kernel is DMA/step-bound
    # anyway so this is not the critical slot.)
    inv_z = 1.0 / jnp.sum(e, axis=0, keepdims=True)     # (1, St)
    p = e * inv_z                                        # (C, St)

    class_ids = lax.broadcasted_iota(jnp.int32, p.shape, 0)   # (C, St)
    onehot = labels == class_ids                               # bool (C, St)

    # Only two wide VPU accumulations per tile:
    #   tp  += onehot * p
    #   den += delta*onehot + (1-delta)*p      (== tp + delta*fn + (1-delta)*fp)
    tp_acc[...] += jnp.where(onehot, p, 0.0)

    if needs_mask:
        # Fold the padded-voxel validity mask into the (1-delta) scale so
        # masking costs nothing extra (padded labels are -1, so they already
        # contribute nothing to the onehot terms).
        off = (pl.program_id(1) * n_s + s_idx) * tile
        pos = off + lax.broadcasted_iota(jnp.int32, (1, tile), 1)
        scale = jnp.where(pos < s_total,
                          jnp.float32(1.0 - delta), jnp.float32(0.0))
    else:
        scale = jnp.float32(1.0 - delta)
    den_acc[...] += (jnp.where(onehot, jnp.float32(delta), jnp.float32(0.0))
                     + p * scale)

    @pl.when(s_idx == n_s - 1)
    def _():
        # One cross-lane reduce per accumulator per (batch, chunk);
        # write (1, 1, C, 1) blocks.
        tp_ref[...] = jnp.sum(tp_acc[...], axis=1, keepdims=True)[None, None]
        den_ref[...] = jnp.sum(den_acc[...], axis=1, keepdims=True)[None, None]


def asymmetric_focal_tversky_loss(y_pred, y_true, *, delta=0.7, gamma=0.75,
                                  epsilon=1e-7, num_classes=4,
                                  max_spatial_tile=65536, logits_dtype=None):
    """y_pred: (B, C, D, H, W) float logits; y_true: (B, D, H, W) int labels.

    Returns (B, C) float32 loss, matching the PyTorch module (stack dim=-1).
    `logits_dtype=jnp.bfloat16` optionally halves the dominant HBM stream
    (f32 math is still used in-kernel); default keeps the input precision.
    """
    B, C, D, H, W = y_pred.shape
    assert C == num_classes
    S = D * H * W

    # ---- spatial tiling: large 128-multiple tiles, tiny padding waste ----
    S128 = _round_up(S, 128)
    cap = max(128, (int(max_spatial_tile) // 128) * 128)
    n_tiles = _cdiv(S128, cap)

    # v7x megacore: with B == 1 split the spatial reduction across 2 chunks
    # on a second "parallel" grid axis (no effect on correctness elsewhere).
    n_chunks = 1
    if B == 1 and n_tiles >= 2:
        n_chunks = 2
        if n_tiles % 2:
            n_tiles += 1

    St = _round_up(_cdiv(S128, n_tiles), 128)
    S_pad = St * n_tiles
    n_s = n_tiles // n_chunks
    needs_mask = (S_pad != S)

    # ---- input preparation (narrow label dtype, optional bf16 logits) ----
    yp = y_pred.reshape(B, C, S)
    if logits_dtype is not None:
        yp = yp.astype(logits_dtype)
    label_dtype = jnp.int8 if num_classes <= 127 else jnp.int32
    yt = y_true.reshape(B, 1, S).astype(label_dtype)

    if S_pad != S:
        yp = jnp.pad(yp, ((0, 0), (0, 0), (0, S_pad - S)))
        yt = jnp.pad(yt, ((0, 0), (0, 0), (0, S_pad - S)), constant_values=-1)

    kernel = functools.partial(
        _aftl_partial_kernel, delta=float(delta), tile=St, n_s=n_s,
        s_total=S, needs_mask=needs_mask)

    part_shape = jax.ShapeDtypeStruct((B, n_chunks, C, 1), jnp.float32)
    out_block = pl.BlockSpec((1, 1, C, 1), lambda b, c, s: (b, c, 0, 0))

    tp_p, den_p = pl.pallas_call(
        kernel,
        out_shape=(part_shape, part_shape),
        grid_spec=pltpu.PrefetchScalarGridSpec(
            num_scalar_prefetch=0,
            grid=(B, n_chunks, n_s),
            in_specs=[
                pl.BlockSpec((1, C, St), lambda b, c, s: (b, 0, c * n_s + s)),
                pl.BlockSpec((1, 1, St), lambda b, c, s: (b, 0, c * n_s + s)),
            ],
            out_specs=[out_block, out_block],
            scratch_shapes=[
                pltpu.VMEM((C, St), jnp.float32),
                pltpu.VMEM((C, St), jnp.float32),
            ],
        ),
        compiler_params=pltpu.CompilerParams(
            dimension_semantics=("parallel", "parallel", "arbitrary")),
    )(yp, yt)

    # ---- tiny O(B*C) finalize: dice + asymmetric focal term ----
    tp = jnp.sum(tp_p[:, :, :, 0], axis=1)        # (B, C)
    den = jnp.sum(den_p[:, :, :, 0], axis=1)      # (B, C) == tp+d*fn+(1-d)*fp

    dice = (tp + epsilon) / (den + epsilon)
    om = 1.0 - dice
    fore = om * jnp.power(om, gamma)              # foreground classes (c != 0)
    cls = jnp.arange(num_classes)[None, :]
    return jnp.where(cls == 0, om, fore)          # background: no focal term


def _reference(y_pred, y_true, *, delta, gamma, epsilon, num_classes):
    p = jax.nn.softmax(y_pred.astype(jnp.float32), axis=1)
    oh = jax.nn.one_hot(y_true, num_classes, dtype=jnp.float32)   # (B,D,H,W,C)
    oh = jnp.transpose(oh, (0, 4, 1, 2, 3))                       # (B,C,D,H,W)
    axis = (2, 3, 4)
    tp = jnp.sum(oh * p, axis=axis)
    fn = jnp.sum(oh * (1.0 - p), axis=axis)
    fp = jnp.sum((1.0 - oh) * p, axis=axis)
    dice = (tp + epsilon) / (tp + delta * fn + (1.0 - delta) * fp + epsilon)
    om = 1.0 - dice
    fore = om * jnp.power(om, gamma)
    cls = jnp.arange(num_classes)[None, :]
    return jnp.where(cls == 0, om, fore)


if __name__ == "__main__":
    def run_case(key, shape, delta, gamma, **kw):
        k1, k2 = jax.random.split(key)
        B, C, D, H, W = shape
        y_pred = jax.random.normal(k1, (B, C, D, H, W), dtype=jnp.float32)
        y_true = jax.random.randint(k2, (B, D, H, W), 0, C, dtype=jnp.int32)
        out = asymmetric_focal_tversky_loss(
            y_pred, y_true, delta=delta, gamma=gamma, num_classes=C, **kw)
        out = jax.block_until_ready(out)
        ref = _reference(y_pred, y_true, delta=delta, gamma=gamma,
                         epsilon=1e-7, num_classes=C)
        assert out.shape == (B, C)
        assert jnp.allclose(out, ref, atol=1e-5, rtol=1e-5), (out, ref)

    k1, k2, k3 = jax.random.split(jax.random.PRNGKey(0), 3)

    # 1) 128-aligned spatial size, single tile, B >= 2.
    run_case(k1, (2, 4, 4, 8, 8), 0.7, 0.75)
    # 2) unaligned spatial size -> padding + folded in-kernel mask, B == 1 ->
    #    two-chunk (megacore) split; small tile cap to exercise the path.
    run_case(k2, (1, 4, 4, 10, 13), 0.7, 0.75, max_spatial_tile=512)
    # 3) multi-step spatial accumulation (several tiles per batch).
    run_case(k3, (2, 4, 4, 16, 16), 0.6, 0.5, max_spatial_tile=256)

    print("KERNEL_OK")
</pallas_src>

<mosaic_0001>
module attributes {stable_mosaic.version = 11 : i64} {
  func.func @_aftl_partial_kernel(%arg0: i32, %arg1: i32, %arg2: i32, %arg3: memref<1x4x256xf32, #tpu.memory_space<vmem>>, %arg4: memref<1x1x256xi8, #tpu.memory_space<vmem>>, %arg5: memref<1x1x4x1xf32, #tpu.memory_space<vmem>>, %arg6: memref<1x1x4x1xf32, #tpu.memory_space<vmem>>, %arg7: memref<4x256xf32, #tpu.memory_space<vmem>>, %arg8: memref<4x256xf32, #tpu.memory_space<vmem>>) attributes {dimension_semantics = [#tpu.dimension_semantics<parallel>, #tpu.dimension_semantics<parallel>, #tpu.dimension_semantics<arbitrary>], iteration_bounds = array<i64: 2, 1, 1>, scalar_prefetch = 0 : i64, scratch_operands = 2 : i64, tpu.core_type = #tpu.core_type<tc>, window_params = [{transform_indices = @transform_0, window_bounds = array<i64: 1, 4, 256>}, {transform_indices = @transform_1, window_bounds = array<i64: 1, 1, 256>}, {transform_indices = @transform_2, window_bounds = array<i64: 1, 1, 4, 1>}, {transform_indices = @transform_3, window_bounds = array<i64: 1, 1, 4, 1>}]} {
    %c0_i32 = arith.constant 0 : i32
    %0 = arith.cmpi eq, %arg2, %c0_i32 : i32
    %1 = arith.extui %0 : i1 to i32
    %c0_i32_0 = arith.constant 0 : i32
    %2 = arith.cmpi ne, %1, %c0_i32_0 : i32
    scf.if %2 {
      %cst_22 = arith.constant 0.000000e+00 : f32
      %39 = vector.broadcast %cst_22 : f32 to vector<4x256xf32>
      %c0_23 = arith.constant 0 : index
      %c0_24 = arith.constant 0 : index
      %40 = vector.load %arg7[%c0_23, %c0_24] : memref<4x256xf32, #tpu.memory_space<vmem>>, vector<4x256xf32>
      tpu.vector_store %arg7[%c0_23, %c0_24], %39 {strides = array<i32>} : memref<4x256xf32, #tpu.memory_space<vmem>>, vector<4x256xf32>,
      %cst_25 = arith.constant 0.000000e+00 : f32
      %41 = vector.broadcast %cst_25 : f32 to vector<4x256xf32>
      %c0_26 = arith.constant 0 : index
      %c0_27 = arith.constant 0 : index
      %42 = vector.load %arg8[%c0_26, %c0_27] : memref<4x256xf32, #tpu.memory_space<vmem>>, vector<4x256xf32>
      tpu.vector_store %arg8[%c0_26, %c0_27], %41 {strides = array<i32>} : memref<4x256xf32, #tpu.memory_space<vmem>>, vector<4x256xf32>,
    } else {
    }
    %c0 = arith.constant 0 : index
    %c0_1 = arith.constant 0 : index
    %c0_2 = arith.constant 0 : index
    %3 = vector.load %arg3[%c0, %c0_1, %c0_2] : memref<1x4x256xf32, #tpu.memory_space<vmem>>, vector<1x4x256xf32>
    %4 = vector.shape_cast %3 : vector<1x4x256xf32> to vector<4x256xf32>
    %c0_3 = arith.constant 0 : index
    %c0_4 = arith.constant 0 : index
    %c0_5 = arith.constant 0 : index
    %5 = vector.load %arg4[%c0_3, %c0_4, %c0_5] : memref<1x1x256xi8, #tpu.memory_space<vmem>>, vector<1x1x256xi8>
    %6 = vector.shape_cast %5 : vector<1x1x256xi8> to vector<1x256xi8>
    %7 = arith.extsi %6 : vector<1x256xi8> to vector<1x256xi32>
    %cst = arith.constant dense<0xFF800000> : vector<256xf32>
    %8 = vector.multi_reduction <maximumf>, %4, %cst [0] : vector<4x256xf32> to vector<256xf32>
    %9 = vector.shape_cast %8 : vector<256xf32> to vector<1x256xf32>
    %10 = vector.broadcast %9 : vector<1x256xf32> to vector<4x256xf32>
    %11 = arith.subf %4, %10 : vector<4x256xf32>
    %12 = math.exp %11 : vector<4x256xf32>
    %cst_6 = arith.constant dense<0.000000e+00> : vector<256xf32>
    %13 = vector.multi_reduction <add>, %12, %cst_6 [0] : vector<4x256xf32> to vector<256xf32>
    %14 = vector.shape_cast %13 : vector<256xf32> to vector<1x256xf32>
    %cst_7 = arith.constant 1.000000e+00 : f32
    %15 = vector.broadcast %cst_7 : f32 to vector<1x256xf32>
    %16 = arith.divf %15, %14 : vector<1x256xf32>
    %17 = vector.broadcast %16 : vector<1x256xf32> to vector<4x256xf32>
    %18 = arith.mulf %12, %17 : vector<4x256xf32>
    %19 = tpu.iota {dimensions = array<i32: 0>} : vector<4x256xi32>
    %20 = vector.broadcast %7 : vector<1x256xi32> to vector<4x256xi32>
    %21 = arith.cmpi eq, %20, %19 : vector<4x256xi32>
    %c0_8 = arith.constant 0 : index
    %c0_9 = arith.constant 0 : index
    %22 = vector.load %arg7[%c0_8, %c0_9] : memref<4x256xf32, #tpu.memory_space<vmem>>, vector<4x256xf32>
    %cst_10 = arith.constant 0.000000e+00 : f32
    %23 = vector.broadcast %cst_10 : f32 to vector<4x256xf32>
    %24 = arith.select %21, %18, %23 : vector<4x256xi1>, vector<4x256xf32>
    %25 = arith.addf %22, %24 : vector<4x256xf32>
    %c0_11 = arith.constant 0 : index
    %c0_12 = arith.constant 0 : index
    %26 = vector.load %arg7[%c0_11, %c0_12] : memref<4x256xf32, #tpu.memory_space<vmem>>, vector<4x256xf32>
    tpu.vector_store %arg7[%c0_11, %c0_12], %25 {strides = array<i32>} : memref<4x256xf32, #tpu.memory_space<vmem>>, vector<4x256xf32>,
    %c0_13 = arith.constant 0 : index
    %c0_14 = arith.constant 0 : index
    %27 = vector.load %arg8[%c0_13, %c0_14] : memref<4x256xf32, #tpu.memory_space<vmem>>, vector<4x256xf32>
    %cst_15 = arith.constant 0.699999988 : f32
    %cst_16 = arith.constant 0.000000e+00 : f32
    %28 = vector.broadcast %cst_15 : f32 to vector<4x256xf32>
    %29 = vector.broadcast %cst_16 : f32 to vector<4x256xf32>
    %30 = arith.select %21, %28, %29 : vector<4x256xi1>, vector<4x256xf32>
    %cst_17 = arith.constant 3.000000e-01 : f32
    %31 = vector.broadcast %cst_17 : f32 to vector<4x256xf32>
    %32 = arith.mulf %18, %31 : vector<4x256xf32>
    %33 = arith.addf %30, %32 : vector<4x256xf32>
    %34 = arith.addf %27, %33 : vector<4x256xf32>
    %c0_18 = arith.constant 0 : index
    %c0_19 = arith.constant 0 : index
    %35 = vector.load %arg8[%c0_18, %c0_19] : memref<4x256xf32, #tpu.memory_space<vmem>>, vector<4x256xf32>
    tpu.vector_store %arg8[%c0_18, %c0_19], %34 {strides = array<i32>} : memref<4x256xf32, #tpu.memory_space<vmem>>, vector<4x256xf32>,
    %c0_i32_20 = arith.constant 0 : i32
    %36 = arith.cmpi eq, %arg2, %c0_i32_20 : i32
    %37 = arith.extui %36 : i1 to i32
    %c0_i32_21 = arith.constant 0 : i32
    %38 = arith.cmpi ne, %37, %c0_i32_21 : i32
    scf.if %38 {
      %c0_22 = arith.constant 0 : index
      %c0_23 = arith.constant 0 : index
      %39 = vector.load %arg7[%c0_22, %c0_23] : memref<4x256xf32, #tpu.memory_space<vmem>>, vector<4x256xf32>
      %cst_24 = arith.constant dense<0.000000e+00> : vector<4xf32>
      %40 = vector.multi_reduction <add>, %39, %cst_24 [1] : vector<4x256xf32> to vector<4xf32>
      %41 = vector.shape_cast %40 : vector<4xf32> to vector<4x1xf32>
      %42 = vector.shape_cast %41 : vector<4x1xf32> to vector<1x1x4x1xf32>
      %c0_25 = arith.constant 0 : index
      %c0_26 = arith.constant 0 : index
      %c0_27 = arith.constant 0 : index
      %c0_28 = arith.constant 0 : index
      %43 = vector.load %arg5[%c0_25, %c0_26, %c0_27, %c0_28] : memref<1x1x4x1xf32, #tpu.memory_space<vmem>>, vector<1x1x4x1xf32>
      tpu.vector_store %arg5[%c0_25, %c0_26, %c0_27, %c0_28], %42 {strides = array<i32>} : memref<1x1x4x1xf32, #tpu.memory_space<vmem>>, vector<1x1x4x1xf32>,
      %c0_29 = arith.constant 0 : index
      %c0_30 = arith.constant 0 : index
      %44 = vector.load %arg8[%c0_29, %c0_30] : memref<4x256xf32, #tpu.memory_space<vmem>>, vector<4x256xf32>
      %cst_31 = arith.constant dense<0.000000e+00> : vector<4xf32>
      %45 = vector.multi_reduction <add>, %44, %cst_31 [1] : vector<4x256xf32> to vector<4xf32>
      %46 = vector.shape_cast %45 : vector<4xf32> to vector<4x1xf32>
      %47 = vector.shape_cast %46 : vector<4x1xf32> to vector<1x1x4x1xf32>
      %c0_32 = arith.constant 0 : index
      %c0_33 = arith.constant 0 : index
      %c0_34 = arith.constant 0 : index
      %c0_35 = arith.constant 0 : index
      %48 = vector.load %arg6[%c0_32, %c0_33, %c0_34, %c0_35] : memref<1x1x4x1xf32, #tpu.memory_space<vmem>>, vector<1x1x4x1xf32>
      tpu.vector_store %arg6[%c0_32, %c0_33, %c0_34, %c0_35], %47 {strides = array<i32>} : memref<1x1x4x1xf32, #tpu.memory_space<vmem>>, vector<1x1x4x1xf32>,
    } else {
    }
    return
  }
  func.func @transform_0(%arg0: i32, %arg1: i32, %arg2: i32) -> (i32, i32, i32) {
    %c1_i32 = arith.constant 1 : i32
    %0 = arith.muli %arg1, %c1_i32 : i32
    %1 = arith.addi %0, %arg2 : i32
    %c0_i32 = arith.constant 0 : i32
    %c0_i32_0 = arith.constant 0 : i32
    return %arg0, %c0_i32, %1 : i32, i32, i32
  }
  func.func @transform_1(%arg0: i32, %arg1: i32, %arg2: i32) -> (i32, i32, i32) {
    %c1_i32 = arith.constant 1 : i32
    %0 = arith.muli %arg1, %c1_i32 : i32
    %1 = arith.addi %0, %arg2 : i32
    %c0_i32 = arith.constant 0 : i32
    %c0_i32_0 = arith.constant 0 : i32
    return %arg0, %c0_i32, %1 : i32, i32, i32
  }
  func.func @transform_2(%arg0: i32, %arg1: i32, %arg2: i32) -> (i32, i32, i32, i32) {
    %c0_i32 = arith.constant 0 : i32
    %c0_i32_0 = arith.constant 0 : i32
    %c0_i32_1 = arith.constant 0 : i32
    return %arg0, %arg1, %c0_i32, %c0_i32_0 : i32, i32, i32, i32
  }
  func.func @transform_3(%arg0: i32, %arg1: i32, %arg2: i32) -> (i32, i32, i32, i32) {
    %c0_i32 = arith.constant 0 : i32
    %c0_i32_0 = arith.constant 0 : i32
    %c0_i32_1 = arith.constant 0 : i32
    return %arg0, %arg1, %c0_i32, %c0_i32_0 : i32, i32, i32, i32
  }
}

</mosaic_0001>

<bundles_post_ra>
// kernel: tpu_custom_call.1
= control target key start
LH: loop header
LB: loop body
LE: loop exit
PB: predicated region body
PF: predicated region fallthrough
CT: control target
= control target key end

     0   :  { %9 = vsyncpa [#allocation5], 0  ;;  %s886_s0 = inlined_call_operand.hbm [shape: f32[2,4,256], index: 0, kind: input, shape index: {}]   ;;  %s887_s1 = inlined_call_operand.vmem [shape: s8[2,1,256], index: 1, kind: input, shape index: {}]   ;;  %s888_s2 = inlined_call_operand.vmem [shape: f32[2,1,4,1], index: 2, kind: output, shape index: {0}]   ;;  %s889_s3 = inlined_call_operand.vmem [shape: f32[2,1,4,1], index: 3, kind: output, shape index: {1}]  }
   0x1   :  { %11 = vsyncpa [#allocation5 + $0x1], 0  ;;  %s743_s12 = smov 0   ;;  %s745_s13 = smov 0  }
   0x2   :  { %s747_s14 = smov 0   ;;  %s749_s15 = smov 0  }
   0x3   :  { %s751_s16 = smov 0   ;;  %s753_s17 = smov 0  }
   0x4 LB: > { %s559_s18 = sadd.s32 4294967295, %s719_s17   ;;  %s36_s19 = sadd.s32 1, %s715_s16  ;;  %s719_s17 = sphi %s753_s17, %s17_s17   ;;  %s715_s16 = sphi %s751_s16, %s899_s16   ;;  %s711_s15 = sphi %s749_s15, %s898_s15   ;;  %s707_s14 = sphi %s747_s14, %s897_s14   ;;  %s703_s13 = sphi %s745_s13, %s896_s13   ;;  %s699_s12 = sphi %s743_s12, %s895_s12  }
   0x5   : > { %p38_p0 = scmp.ge.s32.totalorder %s36_s19, 2  ;;  %s47_s20 = sadd.s32 1, %s707_s14 }
   0x6   : > { %p54_p1 = scmp.ne.s32.totalorder %s707_s14, %s703_s13  ;;  %p55_p2 = scmp.eq.s32.totalorder %s719_s17, 0 }
   0x7   : > { %s901_s19 = smov (%p38_p0, %s36_s19), 0  ;;  %p60_p4 = scmp.ne.s32.totalorder %s703_s13, %s699_s12 }
   0x8   : > { %p779_p3 = por %p55_p2, %p54_p1  ;;  %s42_s22 = ssub.s32 %s715_s16, %s901_s19 }
   0x9   : > { %p61_p5 = scmp.eq.s32.totalorder %s559_s18, 0  ;;  %p45_p6 = scmp.eq.s32.totalorder %s42_s22, 0 }
   0xa   : > { %p582_p8 = scmp.lt.s32.totalorder %s719_s17, 2  ;;  %s170_s25 = sand.u32 1, %s707_s14  }
   0xb   : > { %p786_p7 = por %p61_p5, %p60_p4  ;;  %s573_s26 = sshll.u32 %s715_s16, 7 }
   0xc   : > { %s792_s24 = scalar_select %p45_p6, %s707_s14, %s47_s20  }
   0xd   : > { %s563_s27 = sshll.u32 %s170_s25, 3  ;;  %s799_s30 = scalar_lea.hbm %s886_s0, %s573_s26 }
   0xe   : > { %s174_s4 = scalar_lea.vmem [#allocation4], %s563_s27  ;;  %p803_p9 = pnand %p582_p8, %p779_p3 }
   0xf   : > { %s185_s5 = sshll.u32 %s174_s4, 4  ;;  %s171_s7 = scalar_lea.sflag [#allocation5], %s170_s25  ;;  %s807_s5 = int_to_ptr.vmem [resolvable:$true] %s185_s5 }
  0x10   : > { %s639_s8 = scalar_lea.hbm %s799_s30, 128  ;;  %p641_p13 = pneg %p803_p9 }
  0x11   : > { %p640_p12 = scmp.ne.s32.totalorder %s799_s30, %s639_s8  ;;  %s644_s11 = scalar_lea.hbm %s886_s0, 256 }
  0x12   : > { %p645_p2 = scmp.lt.u32.totalorder %s799_s30, %s886_s0  ;;  %p646_p3 = scmp.lt.u32.totalorder %s644_s11, %s639_s8 }
  0x13   : > { %p642_p0 = pnand %p641_p13, %p640_p12  ;;  %p648_p5 = scmp.lt.u32.totalorder %s639_s8, %s799_s30 }
  0x14   : > { %p647_p4 = por %p646_p3, %p645_p2 }
  0x15   : > { %p643_p1 = pneg %p642_p0 }
  0x16   : > { %p649_p6 = por %p648_p5, %p647_p4 }
  0x18   : > { %p650_p8 = pnand %p649_p6, %p643_p1 }
  0x1a   : > { %653 = shalt.err (!%p650_p8)
}
  0x1b   : > { %s654_s20 = scalar_lea.vmem %s807_s5, 128  ;;  %s721_s21 = smov [#allocation4]  }
  0x1c   : > { %p655_p12 = scmp.ne.s32.totalorder %s807_s5, %s654_s20  ;;  %s659_s22 = sshll.u32 %s721_s21, 4  ;;  %s660_s22 = int_to_ptr.vmem [resolvable:$false] %s659_s22 }
  0x1d   : > { %s661_s25 = scalar_lea.vmem %s660_s22, 256  ;;  %p662_p11 = scmp.lt.s32.totalorder %s807_s5, %s660_s22 }
  0x1e   : > { %p657_p0 = pnand %p655_p12, %p641_p13  ;;  %p663_p2 = scmp.lt.s32.totalorder %s661_s25, %s654_s20 }
  0x20   : > { %p658_p10 = pneg %p657_p0  ;;  %p664_p3 = por %p663_p2, %p662_p11 }
  0x22   : > { %p665_p4 = pnand %p664_p3, %p658_p10 }
  0x24   : > { %668 = shalt.err (!%p665_p4)
}
  0x25   : > { %581 = dma.hbm_to_vmem [thread:$0]  (!%p803_p9), %s799_s30, 128, %s807_s5, %s171_s7  }
  0x26   : > { %p893_p1 = scmp.lt.s32.totalorder %s719_s17, 3  ;;  %p894_p5 = scmp.ge.s32.totalorder %s719_s17, 1 }
  0x28   : > { %p205_p13 = pnand %p894_p5, %p893_p1 }
  0x29   : > { %s210_s26 = sand.u32 (!%p205_p13), 1, %s703_s13  }
  0x2a   : > { %208 = sbr.rel (%p205_p13) target bundleno = 268 (0x10c), region = 28  ;;  %s567_s27 = sshll.u32 (!%p205_p13), %s210_s26, 3 }
  0x2b   : > { %s211_s28 = scalar_lea.sflag (!%p205_p13), [#allocation5], %s210_s26  ;;  %s214_s29 = scalar_lea.vmem (!%p205_p13), [#allocation4], %s567_s27 }
  0x31   : > { %694 = dma.done.wait (%p786_p7), %s211_s28, 128  }
  0x32   : > { %696 = vsyncadd (%p786_p7), %s211_s28, 4294967168  ;;  %vm294_vm0 = vcmask 1043456   ;;  %v288_v0 = vld [vmem:[%s214_s29] sm:$0xff]  ;;  %p259_p7 = scmp.lt.s32.totalorder %s711_s15, 1  ;;  %v342_v30 = vlaneseq  ;;  %v722_v49 = vmov 0.0   ;;  %vm401_vm3 = vcmask 3072  }
  0x33   : > { %v292_v1 = vcombine.high %v288_v0, %v288_v0  ;;  %v295_v2 = vsel %vm294_vm0, %v288_v0, -inf }
  0x34   : > { %v296_v3 = vrot.slane %v295_v2, 4  ;;  %s903_s15 = smov (!%p259_p7, %s711_s15), 1  ;;  %v343_v35 = vshrl.u32 %v342_v30, 7 }
  0x35   : > { %v302_v4 = vsel %vm294_vm0, %v292_v1, -inf  ;;  %s568_s23 = sshll.u32 %s903_s15, 1  ;;  %s569_s6 = sshll.u32 %s903_s15, 2 }
  0x36   : > { %v297_v5 = vmax.f32 %v295_v2, %v296_v3  ;;  %v303_v6 = vrot.slane %v302_v4, 4  ;;  %s265_s5 = scalar_lea.vmem %s887_s1, %s568_s23  ;;  %v346_v39 = vsub.s32 0, %v343_v35  ;;  %v350_v40 = vsub.s32 4, %v343_v35  ;;  %s274_s9 = scalar_lea.vmem %s888_s2, %s569_s6 }
  0x37   : > { %v289_v36 = vld [vmem:[%s265_s5] sm:$0x3]  ;;  %s281_s12 = scalar_lea.vmem %s889_s3, %s569_s6 }
  0x38   : > { %v298_v7 = vrot.slane %v297_v5, 2  ;;  %v304_v8 = vmax.f32 %v302_v4, %v303_v6  ;;  %v290_v38 = vunpack.c.0.s8 %v289_v36 }
  0x3a   : > { %v299_v9 = vmax.f32 %v297_v5, %v298_v7  ;;  %v305_v10 = vrot.slane %v304_v8, 2  ;;  %v347_v41 = vrot.slane %v290_v38, %v346_v39  ;;  %v351_v42 = vrot.slane %v290_v38, %v350_v40 }
  0x3c   : > { %v300_v11 = vrot.slane %v299_v9, 1  ;;  %v306_v12 = vmax.f32 %v304_v8, %v305_v10  ;;  %v355_v44 = vrot.slane %v347_v41, %v346_v39  ;;  %v359_v46 = vrot.slane %v351_v42, %v346_v39 }
  0x3e   : > { %v301_v13 = vmax.f32 %v299_v9, %v300_v11  ;;  %v307_v14 = vrot.slane %v306_v12, 1  ;;  %vm360_vm1 = vcmp.eq.s32.totalorder %v355_v44, %v343_v35  ;;  %vm361_vm2 = vcmp.eq.s32.totalorder %v359_v46, %v343_v35 }
  0x3f   : > { %v375_v50 = vsel %vm360_vm1, 0.7, %v722_v49  ;;  %v376_v54 = vsel %vm361_vm2, 0.7, %v722_v49 }
  0x40   : > { %v308_v15 = vmax.f32 %v306_v12, %v307_v14 }
  0x42   : > { %v311_v16 = vcombine.low %v301_v13, %v308_v15 }
  0x44   : > { %v313_v17 = vsub.f32 %v288_v0, %v311_v16 }
  0x46   : > { %v314_v18 = vmul.f32 1.442695, %v313_v17 }
  0x48   : > { %633 = vpow2.f32 %v314_v18 }
  0x52   : > { %v634_v19 = vpop.eup %633 }
  0x53   : > { %v317_v20 = vcombine.high %v634_v19, %v634_v19  ;;  %v319_v21 = vsel %vm294_vm0, %v634_v19, 0.0 }
  0x54   : > { %v320_v22 = vrot.slane %v319_v21, 4 }
  0x55   : > { %v326_v23 = vsel %vm294_vm0, %v317_v20, 0.0 }
  0x56   : > { %v321_v24 = vadd.f32 %v320_v22, %v319_v21  ;;  %v327_v25 = vrot.slane %v326_v23, 4 }
  0x58   : > { %v322_v26 = vrot.slane %v321_v24, 2  ;;  %v328_v27 = vadd.f32 %v327_v25, %v326_v23 }
  0x5a   : > { %v323_v28 = vadd.f32 %v322_v26, %v321_v24  ;;  %v329_v29 = vrot.slane %v328_v27, 2 }
  0x5c   : > { %v324_v31 = vrot.slane %v323_v28, 1  ;;  %v330_v32 = vadd.f32 %v329_v29, %v328_v27 }
  0x5e   : > { %v325_v33 = vadd.f32 %v324_v31, %v323_v28  ;;  %v331_v34 = vrot.slane %v330_v32, 1 }
  0x60   : > { %v332_v37 = vadd.f32 %v331_v34, %v330_v32  ;;  %635 = vrcp.f32 %v325_v33 }
  0x62   : > { %637 = vrcp.f32 %v332_v37 }
  0x6a   : > { %v636_v43 = vpop.eup %635 }
  0x6c   : > { %v638_v45 = vpop.eup %637 }
  0x6d   : > { %v339_v47 = vcombine.low %v636_v43, %v638_v45 }
  0x6f   : > { %v341_v48 = vmul.f32 %v634_v19, %v339_v47 }
  0x71   : > { %v364_v51 = vcombine.high %v341_v48, %v341_v48  ;;  %v366_v52 = vsel %vm360_vm1, %v341_v48, 0.0  ;;  %v377_v53 = vmul.f32 0.3, %v341_v48 }
  0x73   : > { %v367_v55 = vsel %vm361_vm2, %v364_v51, 0.0  ;;  %v379_v56 = vcombine.high %v377_v53, %v377_v53  ;;  %v381_v57 = vadd.f32 %v377_v53, %v375_v50 }
  0x74   : > { %v370_v58 = vcombine.low %v366_v52, %v367_v55  ;;  %v574_v59 = vcombine.low %v367_v55, %v367_v55 }
  0x75   : > { %v382_v60 = vadd.f32 %v379_v56, %v376_v54 }
  0x76   : > { %v396_v61 = vsel %vm294_vm0, %v370_v58, 0.0  ;;  %v397_v62 = vsel %vm294_vm0, %v574_v59, 0.0 }
  0x77   : > { %v398_v63 = vadd.f32 %v397_v62, %v396_v61  ;;  %v385_v0 = vcombine.low %v381_v57, %v382_v60  ;;  %v575_v1 = vcombine.low %v382_v60, %v382_v60 }
  0x79   : > { %399 = vadd.xlane.f32.xlu0 %v398_v63  ;;  %v407_v2 = vsel %vm294_vm0, %v385_v0, 0.0  ;;  %v408_v3 = vsel %vm294_vm0, %v575_v1, 0.0 }
  0x7a   : > { %v409_v4 = vadd.f32 %v408_v3, %v407_v2 }
  0x7d   : > { %410 = vadd.xlane.f32.xlu0 %v409_v4 }
 0x106   : > { %v400_v5 = vpop.xlane.xlu0 %399 }
 0x107   : > { %402 = vst.msk [vmem:[%s274_s9] sm:$0xf] %vm401_vm3, %v400_v5 }
 0x10a   : > { %v411_v6 = vpop.xlane.xlu0 %410 }
 0x10b   : > { %412 = vst.msk [vmem:[%s281_s12] sm:$0xf] %vm401_vm3, %v411_v6 }
 0x10c PF: > { %s17_s17 = sadd.s32 1, %s719_s17   ;;  %s895_s12 = smov %s703_s13 }
 0x10d   : > { %p14_p9 = scmp.ge.s32.totalorder %s17_s17, 4   ;;  %s896_s13 = smov %s707_s14 }
 0x10e   : > { %s897_s14 = smov %s792_s24  ;;  %s898_s15 = smov %s715_s16 }
 0x10f   : > { %s899_s16 = smov %s901_s19  ;;  %16 = sbr.rel (!%p14_p9) target bundleno = 4 (0x4), region = 91 }
 0x116   :  { %458 = vsyncpa [#allocation5], 1 }
 0x117   :  { %460 = vsyncpa [#allocation5 + $0x1], 1 }

</bundles_post_ra>
